<compile_context>
chip_gen: v7x
topology: tpu7x:2x2x1
jax: 0.10.0
libtpu: 0.0.40
codegen_flags: <defaults>
</compile_context>

<pallas_src>
import jax
import jax.numpy as jnp
from jax.experimental import pallas as pl
from jax.experimental.pallas import tpu as pltpu


def _round_up(x, m):
    return ((x + m - 1) // m) * m


def critic_kernel(x_ref, w1_ref, b1_ref, w2_ref, b2_ref, w3_ref, b3_ref, o_ref):
    # fc1 + ReLU (MXU matmul, f32 accumulate; epilogue in f32 -> v5e safe).
    h1 = jnp.dot(x_ref[...], w1_ref[...], preferred_element_type=jnp.float32)
    h1 = jnp.maximum(h1 + b1_ref[...], 0.0)
    # fc2 + ReLU (cast activations to the weights' dtype so bf16 hits the MXU natively).
    h2 = jnp.dot(h1.astype(w2_ref.dtype), w2_ref[...],
                 preferred_element_type=jnp.float32)
    h2 = jnp.maximum(h2 + b2_ref[...], 0.0)
    # value head: per-row dot with the (1, H) weight row as a VPU multiply + XLU lane
    # reduction, written lane-dense as a (1, TB) row (no N=1 MXU matmul, no masked
    # lane-sparse store path).
    v = jnp.sum(h2 * w3_ref[...], axis=-1) + b3_ref[0, 0]          # (TB,)
    o_ref[...] = v.reshape(1, -1).astype(o_ref.dtype)


def critic_forward(state, params, *, block_batch=512, use_bf16=False):
    """state: (B, num_inputs) f32. Returns (B, 1) f32 values."""
    B, num_inputs = state.shape
    w1, b1 = params["w1"], params["b1"]
    w2, b2 = params["w2"], params["b2"]
    w3, b3 = params["w3"], params["b3"]
    hidden = w1.shape[1]

    # Batch tile: multiple of 8 sublanes; >=128 is store/lane friendly for real batches.
    TB = min(_round_up(block_batch, 8), _round_up(B, 8))
    Bp = _round_up(B, TB)
    num_tiles = Bp // TB

    xs = state
    if Bp != B:
        xs = jnp.pad(xs, ((0, Bp - B), (0, 0)))

    # bf16 MXU inputs (v6e/v7x fast path); biases / w3 / epilogue stay f32.
    mxu_dtype = jnp.bfloat16 if use_bf16 else state.dtype
    xs = xs.astype(mxu_dtype)
    w1c = w1.astype(mxu_dtype)
    w2c = w2.astype(mxu_dtype)
    w3_row = w3.reshape(1, hidden)           # (H, 1) -> (1, H) row for the VPU reduce
    b3_s = b3.reshape(1, 1)

    nbytes = lambda a: a.size * a.dtype.itemsize
    cost = pl.CostEstimate(
        flops=2 * Bp * (num_inputs * hidden + hidden * hidden + hidden),
        transcendentals=0,
        bytes_accessed=(nbytes(xs) + nbytes(w1c) + nbytes(b1) + nbytes(w2c)
                        + nbytes(b2) + nbytes(w3_row) + nbytes(b3_s) + Bp * 4),
    )

    const = lambda i: (0, 0)
    out = pl.pallas_call(
        critic_kernel,
        out_shape=jax.ShapeDtypeStruct((num_tiles, TB), jnp.float32),
        grid=(num_tiles,),
        in_specs=[
            pl.BlockSpec((TB, num_inputs), lambda i: (i, 0)),          # state tile (streams)
            pl.BlockSpec((num_inputs, hidden), const),                 # w1 (VMEM-resident)
            pl.BlockSpec((1, hidden), const),                          # b1
            pl.BlockSpec((hidden, hidden), const),                     # w2
            pl.BlockSpec((1, hidden), const),                          # b2
            pl.BlockSpec((1, hidden), const),                          # w3 row
            pl.BlockSpec((1, 1), const, memory_space=pltpu.SMEM),      # b3 scalar
        ],
        out_specs=pl.BlockSpec((1, TB), lambda i: (i, 0)),             # lane-dense rows
        compiler_params=pltpu.CompilerParams(
            dimension_semantics=("parallel",),                          # v7x: shard over 2 TCs
        ),
        cost_estimate=cost,
    )(xs, w1c, b1, w2c, b2, w3_row, b3_s)

    # (num_tiles, TB) row-major == batch order; drop padding, restore (B, 1).
    return out.reshape(Bp, 1)[:B]


def init_params(key, num_inputs, hidden_size=256):
    """Deterministic init; shapes mirror nn.Linear(num_inputs,H), (H,H), (H,1)."""
    ks = jax.random.split(key, 6)

    def lin(kw, kb, fan_in, fan_out):
        bound = 1.0 / jnp.sqrt(jnp.float32(fan_in))
        w = jax.random.uniform(kw, (fan_in, fan_out), jnp.float32, -bound, bound)
        b = jax.random.uniform(kb, (1, fan_out), jnp.float32, -bound, bound)
        return w, b

    w1, b1 = lin(ks[0], ks[1], num_inputs, hidden_size)
    w2, b2 = lin(ks[2], ks[3], hidden_size, hidden_size)
    w3, b3 = lin(ks[4], ks[5], hidden_size, 1)
    return {"w1": w1, "b1": b1, "w2": w2, "b2": b2, "w3": w3, "b3": b3}


def critic_ref(state, params):
    """Pure-JAX reference for correctness checking."""
    h1 = jnp.maximum(state @ params["w1"] + params["b1"], 0.0)
    h2 = jnp.maximum(h1 @ params["w2"] + params["b2"], 0.0)
    return h2 @ params["w3"] + params["b3"]


if __name__ == "__main__":
    key = jax.random.PRNGKey(0)
    k_param, k_state, k_state2 = jax.random.split(key, 3)

    num_inputs = 32
    hidden_size = 256

    params = init_params(k_param, num_inputs, hidden_size)

    # 1) Small single-tile case (matches the original toy B=8).
    state = jax.random.normal(k_state, (8, num_inputs), jnp.float32)
    out = jax.block_until_ready(critic_forward(state, params))
    ref = critic_ref(state, params)
    assert out.shape == (8, 1), out.shape
    assert jnp.allclose(out, ref, atol=1e-4, rtol=1e-4), "f32 mismatch vs reference"

    # 2) Multi-tile case exercising the batch grid + padding (B=200, TB=128 -> grid=(2,)).
    state2 = jax.random.normal(k_state2, (200, num_inputs), jnp.float32)
    out2 = jax.block_until_ready(critic_forward(state2, params, block_batch=128))
    ref2 = critic_ref(state2, params)
    assert out2.shape == (200, 1), out2.shape
    assert jnp.allclose(out2, ref2, atol=1e-4, rtol=1e-4), "tiled f32 mismatch vs reference"

    # 3) bf16 MXU-input fast path (v6e/v7x); f32 accumulate + f32 epilogue, looser tolerance.
    out_bf16 = jax.block_until_ready(
        critic_forward(state2, params, block_batch=128, use_bf16=True))
    assert out_bf16.shape == (200, 1), out_bf16.shape
    assert jnp.allclose(out_bf16, ref2, atol=5e-2, rtol=5e-2), "bf16 mismatch vs reference"

    print("KERNEL_OK")
</pallas_src>

<mosaic_0001>
module attributes {stable_mosaic.version = 11 : i64} {
  func.func @critic_kernel(%arg0: i32, %arg1: memref<8x32xf32, #tpu.memory_space<vmem>>, %arg2: memref<32x256xf32, #tpu.memory_space<vmem>>, %arg3: memref<1x256xf32, #tpu.memory_space<vmem>>, %arg4: memref<256x256xf32, #tpu.memory_space<vmem>>, %arg5: memref<1x256xf32, #tpu.memory_space<vmem>>, %arg6: memref<1x256xf32, #tpu.memory_space<vmem>>, %arg7: memref<1x1xf32, #tpu.memory_space<smem>>, %arg8: memref<1x8xf32, #tpu.memory_space<vmem>>) attributes {dimension_semantics = [#tpu.dimension_semantics<parallel>], iteration_bounds = array<i64: 1>, scalar_prefetch = 0 : i64, scratch_operands = 0 : i64, tpu.core_type = #tpu.core_type<tc>, window_params = [{transform_indices = @transform_0, window_bounds = array<i64: 8, 32>}, {pipeline_mode = #tpu.pipeline_mode<synchronous>, transform_indices = @transform_1, window_bounds = array<i64: 32, 256>}, {pipeline_mode = #tpu.pipeline_mode<synchronous>, transform_indices = @transform_2, window_bounds = array<i64: 1, 256>}, {pipeline_mode = #tpu.pipeline_mode<synchronous>, transform_indices = @transform_3, window_bounds = array<i64: 256, 256>}, {pipeline_mode = #tpu.pipeline_mode<synchronous>, transform_indices = @transform_4, window_bounds = array<i64: 1, 256>}, {pipeline_mode = #tpu.pipeline_mode<synchronous>, transform_indices = @transform_5, window_bounds = array<i64: 1, 256>}, {transform_indices = @transform_6, window_bounds = array<i64: 1, 1>}, {transform_indices = @transform_7, window_bounds = array<i64: 1, 8>}]} {
    %c0 = arith.constant 0 : index
    %c0_0 = arith.constant 0 : index
    %0 = vector.load %arg1[%c0, %c0_0] : memref<8x32xf32, #tpu.memory_space<vmem>>, vector<8x32xf32>
    %c0_1 = arith.constant 0 : index
    %c0_2 = arith.constant 0 : index
    %1 = vector.load %arg2[%c0_1, %c0_2] : memref<32x256xf32, #tpu.memory_space<vmem>>, vector<32x256xf32>
    %cst = arith.constant dense<0.000000e+00> : vector<8x256xf32>
    %2 = tpu.matmul %0, %1, %cst {dimension_numbers = #tpu.dot_dimension_numbers<[1], [0], [0], [1], [0, 0, 1, 1], [], []>} : vector<8x32xf32>, vector<32x256xf32>, vector<8x256xf32> -> vector<8x256xf32>
    %c0_3 = arith.constant 0 : index
    %c0_4 = arith.constant 0 : index
    %3 = vector.load %arg3[%c0_3, %c0_4] : memref<1x256xf32, #tpu.memory_space<vmem>>, vector<1x256xf32>
    %4 = vector.broadcast %3 : vector<1x256xf32> to vector<8x256xf32>
    %5 = arith.addf %2, %4 : vector<8x256xf32>
    %cst_5 = arith.constant 0.000000e+00 : f32
    %6 = vector.broadcast %cst_5 : f32 to vector<8x256xf32>
    %7 = arith.maximumf %5, %6 : vector<8x256xf32>
    %c0_6 = arith.constant 0 : index
    %c0_7 = arith.constant 0 : index
    %8 = vector.load %arg4[%c0_6, %c0_7] : memref<256x256xf32, #tpu.memory_space<vmem>>, vector<256x256xf32>
    %cst_8 = arith.constant dense<0.000000e+00> : vector<8x256xf32>
    %9 = tpu.matmul %7, %8, %cst_8 {dimension_numbers = #tpu.dot_dimension_numbers<[1], [0], [0], [1], [0, 0, 1, 1], [], []>} : vector<8x256xf32>, vector<256x256xf32>, vector<8x256xf32> -> vector<8x256xf32>
    %c0_9 = arith.constant 0 : index
    %c0_10 = arith.constant 0 : index
    %10 = vector.load %arg5[%c0_9, %c0_10] : memref<1x256xf32, #tpu.memory_space<vmem>>, vector<1x256xf32>
    %11 = vector.broadcast %10 : vector<1x256xf32> to vector<8x256xf32>
    %12 = arith.addf %9, %11 : vector<8x256xf32>
    %cst_11 = arith.constant 0.000000e+00 : f32
    %13 = vector.broadcast %cst_11 : f32 to vector<8x256xf32>
    %14 = arith.maximumf %12, %13 : vector<8x256xf32>
    %c0_12 = arith.constant 0 : index
    %c0_13 = arith.constant 0 : index
    %15 = vector.load %arg6[%c0_12, %c0_13] : memref<1x256xf32, #tpu.memory_space<vmem>>, vector<1x256xf32>
    %16 = vector.broadcast %15 : vector<1x256xf32> to vector<8x256xf32>
    %17 = arith.mulf %14, %16 : vector<8x256xf32>
    %cst_14 = arith.constant dense<0.000000e+00> : vector<8xf32>
    %18 = vector.multi_reduction <add>, %17, %cst_14 [1] : vector<8x256xf32> to vector<8xf32>
    %c0_15 = arith.constant 0 : index
    %c0_16 = arith.constant 0 : index
    %19 = memref.load %arg7[%c0_15, %c0_16] : memref<1x1xf32, #tpu.memory_space<smem>>
    %20 = vector.broadcast %19 : f32 to vector<8xf32>
    %21 = arith.addf %18, %20 : vector<8xf32>
    %22 = vector.shape_cast %21 : vector<8xf32> to vector<1x8xf32>
    %c0_17 = arith.constant 0 : index
    %c0_18 = arith.constant 0 : index
    %23 = vector.load %arg8[%c0_17, %c0_18] : memref<1x8xf32, #tpu.memory_space<vmem>>, vector<1x8xf32>
    tpu.vector_store %arg8[%c0_17, %c0_18], %22 {strides = array<i32>} : memref<1x8xf32, #tpu.memory_space<vmem>>, vector<1x8xf32>,
    return
  }
  func.func @transform_0(%arg0: i32) -> (i32, i32) {
    %c0_i32 = arith.constant 0 : i32
    %c0_i32_0 = arith.constant 0 : i32
    return %arg0, %c0_i32 : i32, i32
  }
  func.func @transform_1(%arg0: i32) -> (i32, i32) {
    %c0_i32 = arith.constant 0 : i32
    %c0_i32_0 = arith.constant 0 : i32
    %c0_i32_1 = arith.constant 0 : i32
    return %c0_i32, %c0_i32_0 : i32, i32
  }
  func.func @transform_2(%arg0: i32) -> (i32, i32) {
    %c0_i32 = arith.constant 0 : i32
    %c0_i32_0 = arith.constant 0 : i32
    %c0_i32_1 = arith.constant 0 : i32
    return %c0_i32, %c0_i32_0 : i32, i32
  }
  func.func @transform_3(%arg0: i32) -> (i32, i32) {
    %c0_i32 = arith.constant 0 : i32
    %c0_i32_0 = arith.constant 0 : i32
    %c0_i32_1 = arith.constant 0 : i32
    return %c0_i32, %c0_i32_0 : i32, i32
  }
  func.func @transform_4(%arg0: i32) -> (i32, i32) {
    %c0_i32 = arith.constant 0 : i32
    %c0_i32_0 = arith.constant 0 : i32
    %c0_i32_1 = arith.constant 0 : i32
    return %c0_i32, %c0_i32_0 : i32, i32
  }
  func.func @transform_5(%arg0: i32) -> (i32, i32) {
    %c0_i32 = arith.constant 0 : i32
    %c0_i32_0 = arith.constant 0 : i32
    %c0_i32_1 = arith.constant 0 : i32
    return %c0_i32, %c0_i32_0 : i32, i32
  }
  func.func @transform_6(%arg0: i32) -> (i32, i32) {
    %c0_i32 = arith.constant 0 : i32
    %c0_i32_0 = arith.constant 0 : i32
    %c0_i32_1 = arith.constant 0 : i32
    return %c0_i32, %c0_i32_0 : i32, i32
  }
  func.func @transform_7(%arg0: i32) -> (i32, i32) {
    %c0_i32 = arith.constant 0 : i32
    %c0_i32_0 = arith.constant 0 : i32
    return %arg0, %c0_i32 : i32, i32
  }
}

</mosaic_0001>

<bundles_post_ra>
// kernel: tpu_custom_call.1
= control target key start
LH: loop header
LB: loop body
LE: loop exit
PB: predicated region body
PF: predicated region fallthrough
CT: control target
= control target key end

     0   :  { %13 = vsyncpa [#allocation4], 0  ;;  %s647_s0 = inlined_call_operand.hbm [shape: f32[8,32], index: 0, kind: input, shape index: {}]   ;;  %s648_s1 = inlined_call_operand.hbm [shape: f32[32,256], index: 1, kind: input, shape index: {}]   ;;  %s649_s2 = inlined_call_operand.vmem [shape: f32[1,256], index: 2, kind: input, shape index: {}]   ;;  %s650_s3 = inlined_call_operand.hbm [shape: f32[256,256], index: 3, kind: input, shape index: {}]   ;;  %s651_s4 = inlined_call_operand.vmem [shape: f32[1,256], index: 4, kind: input, shape index: {}]   ;;  %s652_s5 = inlined_call_operand.vmem [shape: f32[1,256], index: 5, kind: input, shape index: {}]   ;;  %s653_s6 = inlined_call_operand.<no memory space> [shape: f32[1,1], index: 6, kind: input, shape index: {}]   ;;  %s654_s7 = inlined_call_operand.hbm [shape: f32[1,8], index: 7, kind: output, shape index: {}]  }
   0x1   :  { %14 = vsyncpa [#allocation7], 0 }
   0x2   :  { %15 = vsyncpa [#allocation5], 0  ;;  %s534_s24 = smov [#allocation6]   ;;  %s440_s28 = scalar_lea.hbm %s648_s1, 1024 }
   0x3   :  { %s31_s25 = sshll.u32 %s534_s24, 4  ;;  %p441_p0 = scmp.ne.s32.totalorder %s648_s1, %s440_s28  ;;  %s32_s25 = int_to_ptr.vmem [resolvable:$true] %s31_s25 }
   0x4   :  { %p444_p1 = scmp.lt.u32.totalorder %s440_s28, %s648_s1 }
   0x6   :  { %p446_p2 = pnand %p444_p1, %p441_p0 }
   0x8   :  { %449 = shalt.err (!%p446_p2)
}
   0x9   :  { %s450_s10 = scalar_lea.vmem %s32_s25, 1024  ;;  %p455_p4 = scmp.lt.s32.totalorder %s32_s25, %s32_s25 }
   0xa   :  { %p451_p3 = scmp.ne.s32.totalorder %s32_s25, %s450_s10  ;;  %p456_p5 = scmp.lt.s32.totalorder %s450_s10, %s450_s10 }
   0xc   :  { %p457_p6 = por %p456_p5, %p455_p4 }
   0xe   :  { %p458_p7 = pnand %p457_p6, %p451_p3 }
  0x10   :  { %461 = shalt.err (!%p458_p7)
}
  0x11   :  { %s535_s11 = smov 256   ;;  %s536_s12 = smov 16  }
  0x12   :  { %37 = dma.hbm_to_vmem [thread:$0]  %s648_s1, 1024, %s32_s25, [#allocation7], %s535_s11, %s535_s11, %s536_s12  }
  0x13   :  { %s537_s15 = smov [#allocation3]   ;;  %s538_s17 = smov [#allocation8]  }
  0x14   :  { %s22_s16 = sshll.u32 %s537_s15, 4  ;;  %s45_s18 = sshll.u32 %s538_s17, 4  ;;  %s23_s16 = int_to_ptr.vmem [resolvable:$true] %s22_s16  ;;  %s46_s18 = int_to_ptr.vmem [resolvable:$true] %s45_s18 }
  0x15   :  { %s462_s21 = scalar_lea.hbm %s647_s0, 128 }
  0x16   :  { %p463_p8 = scmp.ne.s32.totalorder %s647_s0, %s462_s21  ;;  %p466_p9 = scmp.lt.u32.totalorder %s462_s21, %s647_s0 }
  0x18   :  { %p468_p10 = pnand %p466_p9, %p463_p8 }
  0x1a   :  { %471 = shalt.err (!%p468_p10)
}
  0x1b   :  { %s472_s1 = scalar_lea.vmem %s23_s16, 128  ;;  %p477_p12 = scmp.lt.s32.totalorder %s23_s16, %s23_s16 }
  0x1c   :  { %p473_p11 = scmp.ne.s32.totalorder %s23_s16, %s472_s1  ;;  %p478_p13 = scmp.lt.s32.totalorder %s472_s1, %s472_s1 }
  0x1e   :  { %p479_p0 = por %p478_p13, %p477_p12 }
  0x20   :  { %p480_p1 = pnand %p479_p0, %p473_p11 }
  0x22   :  { %483 = shalt.err (!%p480_p1)
}
  0x23   :  { %25 = dma.hbm_to_vmem [thread:$0]  %s647_s0, 128, %s23_s16, [#allocation4]  }
  0x24   :  { %s484_s30 = scalar_lea.hbm %s650_s3, 8192 }
  0x25   :  { %p485_p2 = scmp.ne.s32.totalorder %s650_s3, %s484_s30  ;;  %p488_p3 = scmp.lt.u32.totalorder %s484_s30, %s650_s3 }
  0x27   :  { %p490_p4 = pnand %p488_p3, %p485_p2 }
  0x29   :  { %493 = shalt.err (!%p490_p4)
}
  0x2a   :  { %s494_s14 = scalar_lea.vmem %s46_s18, 8192  ;;  %p499_p6 = scmp.lt.s32.totalorder %s46_s18, %s46_s18 }
  0x2b   :  { %p495_p5 = scmp.ne.s32.totalorder %s46_s18, %s494_s14  ;;  %p500_p7 = scmp.lt.s32.totalorder %s494_s14, %s494_s14 }
  0x2d   :  { %p501_p8 = por %p500_p7, %p499_p6 }
  0x2f   :  { %p502_p9 = pnand %p501_p8, %p495_p5 }
  0x31   :  { %505 = shalt.err (!%p502_p9)
}
  0x32   :  { %51 = dma.hbm_to_vmem [thread:$0]  %s650_s3, 8192, %s46_s18, [#allocation7], %s535_s11, %s535_s11, %s536_s12  }
  0x33   :  { %528 = dma.done.wait [#allocation4], 128  }
  0x34   :  { %529 = vsyncadd [#allocation4], 4294967168 }
  0x35   :  { %530 = dma.done.wait [#allocation7], 9216  }
  0x36   :  { %531 = vsyncadd [#allocation7], 4294958080  ;;  %v539_v0 = vmov 0.0   ;;  %v69_v1 = vld [vmem:[#allocation6 + $0x8] sm:$0xff]  ;;  %v71_v2 = vld [vmem:[#allocation6 + $0x18] sm:$0xff]  ;;  %vm88_vm0 = vcmask 261120  }
  0x37   :  { %156 = vmatprep.mubr.f32.mxu0 %v539_v0  ;;  %v68_v3 = vld [vmem:[#allocation6] sm:$0xff]  ;;  %v361_v4 = vpack.c.bf16 %v71_v2, %v69_v1  ;;  %v70_v5 = vld [vmem:[#allocation6 + $0x10] sm:$0xff]  ;;  %v73_v6 = vld [vmem:[#allocation6 + $0x28] sm:$0xff]  ;;  %vm342_vm1 = vcmask 57344  }
  0x38   :  { %v75_v7 = vld [vmem:[#allocation6 + $0x38] sm:$0xff]  ;;  %v363_v8 = vpack.c.bf16 %v70_v5, %v68_v3  ;;  %v72_v10 = vld [vmem:[#allocation6 + $0x20] sm:$0xff]  ;;  %v74_v11 = vld [vmem:[#allocation6 + $0x30] sm:$0xff] }
  0x39   :  { %v365_v9 = vpack.c.bf16 %v75_v7, %v73_v6  ;;  %362 = vmatprep.subr.bf16.mxu0 %v361_v4  ;;  %v166_v12 = vld [vmem:[#allocation8 + $0x8] sm:$0xff]  ;;  %v168_v13 = vld [vmem:[#allocation8 + $0x18] sm:$0xff]  ;;  %v165_v14 = vld [vmem:[#allocation8] sm:$0xff]  ;;  %v367_v15 = vpack.c.bf16 %v74_v11, %v72_v10 }
  0x3a   :  { %364 = vmatpush1.bf16.msra.mxu0 %v363_v8  ;;  %v369_v16 = vpack.c.bf16 %v168_v13, %v166_v12  ;;  %v167_v17 = vld [vmem:[#allocation8 + $0x10] sm:$0xff]  ;;  %v170_v18 = vld [vmem:[#allocation8 + $0x28] sm:$0xff]  ;;  %v172_v19 = vld [vmem:[#allocation8 + $0x38] sm:$0xff] }
  0x3b   :  { %366 = vmatprep.subr.bf16.mxu0 %v365_v9  ;;  %v371_v20 = vpack.c.bf16 %v167_v17, %v165_v14  ;;  %v373_v21 = vpack.c.bf16 %v172_v19, %v170_v18  ;;  %v169_v22 = vld [vmem:[#allocation8 + $0x20] sm:$0xff]  ;;  %v171_v23 = vld [vmem:[#allocation8 + $0x30] sm:$0xff]  ;;  %v174_v24 = vld [vmem:[#allocation8 + $0x48] sm:$0xff] }
  0x3c   :  { %370 = vmatprep.subr.bf16.mxu1 %v369_v16  ;;  %v176_v25 = vld [vmem:[#allocation8 + $0x58] sm:$0xff]  ;;  %v375_v26 = vpack.c.bf16 %v171_v23, %v169_v22  ;;  %v173_v29 = vld [vmem:[#allocation8 + $0x40] sm:$0xff]  ;;  %v175_v30 = vld [vmem:[#allocation8 + $0x50] sm:$0xff] }
  0x3d   :  { %372 = vmatpush1.bf16.msra.mxu1 %v371_v20  ;;  %v67_v27 = vld [vmem:[#allocation3] sm:$0xff]  ;;  %v377_v28 = vpack.c.bf16 %v176_v25, %v174_v24  ;;  %v178_v31 = vld [vmem:[#allocation8 + $0x68] sm:$0xff]  ;;  %v379_v33 = vpack.c.bf16 %v175_v30, %v173_v29  ;;  %v177_v35 = vld [vmem:[#allocation8 + $0x60] sm:$0xff] }
  0x3e   :  { %368 = vmatpush1.bf16.msra.mxu0 %v367_v15  ;;  %374 = vmatprep.subr.bf16.mxu1 %v373_v21  ;;  %v180_v32 = vld [vmem:[#allocation8 + $0x78] sm:$0xff]  ;;  %v179_v36 = vld [vmem:[#allocation8 + $0x70] sm:$0xff]  ;;  %v182_v37 = vld [vmem:[#allocation8 + $0x88] sm:$0xff] }
  0x3f   :  { %v381_v34 = vpack.c.bf16 %v180_v32, %v178_v31  ;;  %v184_v38 = vld [vmem:[#allocation8 + $0x98] sm:$0xff]  ;;  %v383_v39 = vpack.c.bf16 %v179_v36, %v177_v35  ;;  %v181_v41 = vld [vmem:[#allocation8 + $0x80] sm:$0xff]  ;;  %v183_v42 = vld [vmem:[#allocation8 + $0x90] sm:$0xff] }
  0x40   :  { %v385_v40 = vpack.c.bf16 %v184_v38, %v182_v37  ;;  %v186_v43 = vld [vmem:[#allocation8 + $0xa8] sm:$0xff]  ;;  %v188_v44 = vld [vmem:[#allocation8 + $0xb8] sm:$0xff]  ;;  %v387_v45 = vpack.c.bf16 %v183_v42, %v181_v41  ;;  %v185_v47 = vld [vmem:[#allocation8 + $0xa0] sm:$0xff] }
  0x41   :  { %360 = vmatmul.mubr.msk.f32.vlgmr.msra.gmra.mrb[0].mxu0 %vm88_vm0, %v67_v27  ;;  %376 = vmatpush1.bf16.msra.mxu1 %v375_v26  ;;  %v389_v46 = vpack.c.bf16 %v188_v44, %v186_v43  ;;  %v187_v48 = vld [vmem:[#allocation8 + $0xb0] sm:$0xff]  ;;  %v190_v49 = vld [vmem:[#allocation8 + $0xc8] sm:$0xff]  ;;  %v192_v50 = vld [vmem:[#allocation8 + $0xd8] sm:$0xff] }
  0x42   :  { %378 = vmatprep.subr.bf16.mxu1 %v377_v28  ;;  %v391_v51 = vpack.c.bf16 %v187_v48, %v185_v47  ;;  %v393_v52 = vpack.c.bf16 %v192_v50, %v190_v49  ;;  %v189_v53 = vld [vmem:[#allocation8 + $0xc0] sm:$0xff]  ;;  %v191_v54 = vld [vmem:[#allocation8 + $0xd0] sm:$0xff]  ;;  %v194_v55 = vld [vmem:[#allocation8 + $0xe8] sm:$0xff] }
  0x43   :  { %v196_v56 = vld [vmem:[#allocation8 + $0xf8] sm:$0xff]  ;;  %v395_v57 = vpack.c.bf16 %v191_v54, %v189_v53  ;;  %v193_v59 = vld [vmem:[#allocation8 + $0xe0] sm:$0xff]  ;;  %v195_v60 = vld [vmem:[#allocation8 + $0xf0] sm:$0xff] }
  0x44   :  { %v397_v58 = vpack.c.bf16 %v196_v56, %v194_v55  ;;  %v198_v61 = vld [vmem:[#allocation8 + $0x108] sm:$0xff]  ;;  %v200_v62 = vld [vmem:[#allocation8 + $0x118] sm:$0xff]  ;;  %v399_v63 = vpack.c.bf16 %v195_v60, %v193_v59  ;;  %v197_v1 = vld [vmem:[#allocation8 + $0x100] sm:$0xff] }
  0x45   :  { %380 = vmatpush1.bf16.msra.mxu1 %v379_v33  ;;  %v401_v0 = vpack.c.bf16 %v200_v62, %v198_v61  ;;  %v199_v2 = vld [vmem:[#allocation8 + $0x110] sm:$0xff]  ;;  %v202_v3 = vld [vmem:[#allocation8 + $0x128] sm:$0xff]  ;;  %v204_v4 = vld [vmem:[#allocation8 + $0x138] sm:$0xff] }
  0x46   :  { %382 = vmatprep.subr.bf16.mxu1 %v381_v34  ;;  %v403_v5 = vpack.c.bf16 %v199_v2, %v197_v1  ;;  %v405_v6 = vpack.c.bf16 %v204_v4, %v202_v3  ;;  %v201_v7 = vld [vmem:[#allocation8 + $0x120] sm:$0xff]  ;;  %v203_v8 = vld [vmem:[#allocation8 + $0x130] sm:$0xff]  ;;  %v206_v9 = vld [vmem:[#allocation8 + $0x148] sm:$0xff] }
  0x47   :  { %v208_v10 = vld [vmem:[#allocation8 + $0x158] sm:$0xff]  ;;  %v407_v11 = vpack.c.bf16 %v203_v8, %v201_v7  ;;  %v205_v13 = vld [vmem:[#allocation8 + $0x140] sm:$0xff]  ;;  %v207_v14 = vld [vmem:[#allocation8 + $0x150] sm:$0xff] }
  0x48   :  { %v409_v12 = vpack.c.bf16 %v208_v10, %v206_v9  ;;  %v210_v15 = vld [vmem:[#allocation8 + $0x168] sm:$0xff]  ;;  %v212_v16 = vld [vmem:[#allocation8 + $0x178] sm:$0xff]  ;;  %v411_v17 = vpack.c.bf16 %v207_v14, %v205_v13  ;;  %v209_v19 = vld [vmem:[#allocation8 + $0x160] sm:$0xff] }
  0x49   :  { %384 = vmatpush1.bf16.msra.mxu1 %v383_v39  ;;  %v413_v18 = vpack.c.bf16 %v212_v16, %v210_v15  ;;  %v211_v20 = vld [vmem:[#allocation8 + $0x170] sm:$0xff]  ;;  %v214_v21 = vld [vmem:[#allocation8 + $0x188] sm:$0xff]  ;;  %v216_v22 = vld [vmem:[#allocation8 + $0x198] sm:$0xff] }
  0x4a   :  { %386 = vmatprep.subr.bf16.mxu1 %v385_v40  ;;  %v415_v23 = vpack.c.bf16 %v211_v20, %v209_v19  ;;  %v417_v24 = vpack.c.bf16 %v216_v22, %v214_v21  ;;  %v213_v25 = vld [vmem:[#allocation8 + $0x180] sm:$0xff]  ;;  %v215_v26 = vld [vmem:[#allocation8 + $0x190] sm:$0xff]  ;;  %v218_v27 = vld [vmem:[#allocation8 + $0x1a8] sm:$0xff] }
  0x4b   :  { %v220_v28 = vld [vmem:[#allocation8 + $0x1b8] sm:$0xff]  ;;  %v419_v29 = vpack.c.bf16 %v215_v26, %v213_v25  ;;  %v217_v31 = vld [vmem:[#allocation8 + $0x1a0] sm:$0xff]  ;;  %v219_v32 = vld [vmem:[#allocation8 + $0x1b0] sm:$0xff] }
  0x4c   :  { %v421_v30 = vpack.c.bf16 %v220_v28, %v218_v27  ;;  %v222_v33 = vld [vmem:[#allocation8 + $0x1c8] sm:$0xff]  ;;  %v224_v34 = vld [vmem:[#allocation8 + $0x1d8] sm:$0xff]  ;;  %v423_v35 = vpack.c.bf16 %v219_v32, %v217_v31  ;;  %v221_v37 = vld [vmem:[#allocation8 + $0x1c0] sm:$0xff] }
  0x4d   :  { %388 = vmatpush1.bf16.msra.mxu1 %v387_v45  ;;  %v425_v36 = vpack.c.bf16 %v224_v34, %v222_v33  ;;  %v223_v38 = vld [vmem:[#allocation8 + $0x1d0] sm:$0xff]  ;;  %v226_v40 = vld [vmem:[#allocation8 + $0x1e8] sm:$0xff]  ;;  %v228_v41 = vld [vmem:[#allocation8 + $0x1f8] sm:$0xff] }
  0x4e   :  { %390 = vmatprep.subr.bf16.mxu1 %v389_v46  ;;  %v427_v39 = vpack.c.bf16 %v223_v38, %v221_v37  ;;  %v429_v42 = vpack.c.bf16 %v228_v41, %v226_v40  ;;  %v225_v43 = vld [vmem:[#allocation8 + $0x1e0] sm:$0xff]  ;;  %v227_v44 = vld [vmem:[#allocation8 + $0x1f0] sm:$0xff]  ;;  %v78_v46 = vlaneseq  ;;  %v76_v49 = vld [vmem:[%s649_s2] sm:$0x3] }
  0x4f   :  { %v431_v45 = vpack.c.bf16 %v227_v44, %v225_v43  ;;  %v229_v59 = vld [vmem:[%s651_s4] sm:$0x3] }
  0x50   :  { %v79_v47 = vshrl.u32 %v78_v46, 7  ;;  %v314_v62 = vld [vmem:[%s652_s5] sm:$0x3]  ;;  %v336_v10 = vand.u32 127, %v78_v46  ;;  %s540_s5 = smov [#allocation9]  }
  0x51   :  { %392 = vmatpush1.bf16.msra.mxu1 %v391_v51  ;;  %s350_s19 = sshll.u32 %s540_s5, 4  ;;  %s351_s19 = int_to_ptr.vmem [resolvable:$true] %s350_s19 }
  0x52   :  { %394 = vmatprep.subr.bf16.mxu1 %v393_v52  ;;  %v80_v48 = vsub.s32 0, %v79_v47  ;;  %v84_v50 = vsub.s32 1, %v79_v47  ;;  %s506_s20 = scalar_lea.vmem %s351_s19, 16  ;;  %s510_s21 = scalar_lea.vmem %s351_s19, 32 }
  0x53   :  { %p507_p10 = scmp.ne.s32.totalorder %s351_s19, %s506_s20  ;;  %p511_p11 = scmp.lt.s32.totalorder %s351_s19, %s351_s19 }
  0x54   :  { %v81_v51 = vrot.slane %v76_v49, %v80_v48  ;;  %v85_v52 = vrot.slane %v76_v49, %v84_v50  ;;  %v234_v60 = vrot.slane %v229_v59, %v80_v48  ;;  %v238_v61 = vrot.slane %v229_v59, %v84_v50  ;;  %p512_p12 = scmp.lt.s32.totalorder %s510_s21, %s506_s20 }
  0x55   :  { %396 = vmatpush1.bf16.msra.mxu1 %v395_v57  ;;  %v319_v2 = vrot.slane %v314_v62, %v80_v48  ;;  %v323_v4 = vrot.slane %v314_v62, %v84_v50 }
  0x56   :  { %398 = vmatprep.subr.bf16.mxu1 %v397_v58  ;;  %p513_p13 = por %p512_p12, %p511_p11 }
  0x58   :  { %p514_p0 = pnand %p513_p13, %p507_p10 }
  0x59   :  { %400 = vmatpush1.bf16.msra.mxu1 %v399_v63 }
  0x5a   :  { %402 = vmatprep.subr.bf16.mxu1 %v401_v0 }
  0x5d   :  { %404 = vmatpush1.bf16.msra.mxu1 %v403_v5 }
  0x5e   :  { %406 = vmatprep.subr.bf16.mxu1 %v405_v6 }
  0x61   :  { %408 = vmatpush1.bf16.msra.mxu1 %v407_v11  ;;  %v332_v11 = vstv %s653_s6 }
  0x62   :  { %410 = vmatprep.subr.bf16.mxu1 %v409_v12  ;;  %v339_v12 = vsub.s32 %v336_v10, %v79_v47 }
  0x65   :  { %412 = vmatpush1.bf16.msra.mxu1 %v411_v17 }
  0x66   :  { %414 = vmatprep.subr.bf16.mxu1 %v413_v18 }
  0x69   :  { %416 = vmatpush1.bf16.msra.mxu1 %v415_v23 }
  0x6a   :  { %418 = vmatprep.subr.bf16.mxu1 %v417_v24 }
  0x6d   :  { %420 = vmatpush1.bf16.msra.mxu1 %v419_v29 }
  0x6e   :  { %422 = vmatprep.subr.bf16.mxu1 %v421_v30 }
  0x71   :  { %424 = vmatpush1.bf16.msra.mxu1 %v423_v35 }
  0x72   :  { %426 = vmatprep.subr.bf16.mxu1 %v425_v36 }
  0x75   :  { %428 = vmatpush1.bf16.msra.mxu1 %v427_v39 }
  0x76   :  { %430 = vmatprep.subr.bf16.mxu1 %v429_v42 }
  0x79   :  { %432 = vmatpush1.bf16.msra.mxu1 %v431_v45 }
 0x114   :  { %v158_v53 = vpop.f32.mrb[0].mxu0 }
 0x115   :  { %v159_v54 = vadd.f32 %v158_v53, %v81_v51  ;;  %v160_v55 = vpop.f32.mrb[1].mxu0 }
 0x116   :  { %v161_v56 = vadd.f32 %v160_v55, %v85_v52 }
 0x117   :  { %v163_v58 = vmax.f32 %v159_v54, 0.0 }
 0x118   :  { %v164_v57 = vmax.f32 %v161_v56, 0.0 }
 0x11a   :  { %305 = vmatprep.mubr.f32.mxu1 %v164_v57 }
 0x11b   :  { %306 = vmatmul.mubr.f32.vlgmr.msra.gmra.mrb[0].mxu1 %v163_v58 }
 0x1ee   :  { %v307_v63 = vpop.f32.mrb[0].mxu1 }
 0x1ef   :  { %v308_v0 = vadd.f32 %v307_v63, %v234_v60  ;;  %v309_v1 = vpop.f32.mrb[1].mxu1 }
 0x1f0   :  { %v310_v3 = vadd.f32 %v309_v1, %v238_v61 }
 0x1f1   :  { %v312_v5 = vmax.f32 %v308_v0, 0.0 }
 0x1f2   :  { %v313_v6 = vmax.f32 %v310_v3, 0.0 }
 0x1f3   :  { %v326_v7 = vmul.f32 %v319_v2, %v312_v5 }
 0x1f4   :  { %v327_v8 = vmul.f32 %v323_v4, %v313_v6 }
 0x1f6   :  { %v328_v9 = vadd.f32 %v327_v8, %v326_v7 }
 0x1f8   :  { %329 = vadd.xlane.f32.xlu0 %v328_v9 }
 0x285   :  { %v330_v13 = vpop.xlane.xlu0 %329 }
 0x286   :  { %v333_v14 = vadd.f32 %v332_v11, %v330_v13 }
 0x288   :  { %v340_v15 = vrot.slane %v333_v14, %v339_v12 }
 0x28a   :  { %343 = vst.msk [vmem:[#allocation9] sm:$0x1] %vm342_vm1, %v340_v15 }
 0x28b   :  { %517 = shalt.err (!%p514_p0)
}
 0x28c   :  { %s518_s6 = scalar_lea.hbm %s654_s7, 16 }
 0x28d   :  { %p519_p1 = scmp.ne.s32.totalorder %s654_s7, %s518_s6  ;;  %p522_p2 = scmp.lt.u32.totalorder %s518_s6, %s654_s7 }
 0x28f   :  { %p524_p3 = pnand %p522_p2, %p519_p1 }
 0x291   :  { %527 = shalt.err (!%p524_p3)
}
 0x292   :  { %353 = dma.vmem_to_hbm [thread:$0]  %s351_s19, 16, %s654_s7, [#allocation5]  }
 0x293   :  { %532 = dma.done.wait [#allocation5], 16  }
 0x294   :  { %533 = vsyncadd [#allocation5], 4294967280 }
 0x295   :  { %357 = vsyncpa [#allocation4], 1 }
 0x296   :  { %358 = vsyncpa [#allocation7], 1 }
 0x297   :  { %359 = vsyncpa [#allocation5], 1 }

</bundles_post_ra>
